<compile_context>
chip_gen: v5e
topology: v5e:2x2
jax: 0.10.0
libtpu: 0.0.40
codegen_flags: <defaults>
</compile_context>

<pallas_src>
import functools

import jax
import jax.numpy as jnp
from jax.experimental import pallas as pl
from jax.experimental.pallas import tpu as pltpu


# ---------------------------------------------------------------------------
# Parameter init (matches nn.Linear shapes / init scheme)
# ---------------------------------------------------------------------------
def init_params(key, num_capsule_tall, feature_sizes, input_data_size):
    """Deterministic per-layer (W^T, b) matching nn.Linear shapes."""
    params = []
    for i in range(len(feature_sizes) - 1):
        if i != 0:
            num_in = feature_sizes[i] + 1
        else:
            num_in = input_data_size // num_capsule_tall + feature_sizes[0] + 1
        num_out = feature_sizes[i + 1]
        key, kw, kb = jax.random.split(key, 3)
        bound = 1.0 / jnp.sqrt(float(num_in))
        w_t = jax.random.uniform(
            kw, (num_in, num_out), jnp.float32, minval=-bound, maxval=bound
        )
        b = jax.random.uniform(
            kb, (num_out,), jnp.float32, minval=-bound, maxval=bound
        )
        params.append((w_t, b))
    return params


# ---------------------------------------------------------------------------
# Wrapper-side (one-time) weight restructuring
# ---------------------------------------------------------------------------
def _precompute_fused_params(params, *, num_capsule_wide, num_capsule_tall,
                             feature_sizes, input_data_size, roll_each_layer):
    """Block-diagonal weights with the inter-layer roll + col-feature folded in."""
    T = num_capsule_tall
    L = len(feature_sizes) - 1
    R = roll_each_layer
    C = num_capsule_wide
    psize = input_data_size // T
    eye_t = jnp.eye(T, dtype=jnp.float32)

    prim_w = None
    layer_tensors = []
    for l, (w_t, b) in enumerate(params):
        fs_in = feature_sizes[l]
        n_out = feature_sizes[l + 1]
        if l == 0:
            w_prim = w_t[:psize]                     # (psize, n_out)
            w_feat = w_t[psize:psize + fs_in]        # (fs_in, n_out)
            w_col = w_t[psize + fs_in]               # (n_out,)
            prim_w = jnp.kron(eye_t, w_prim)         # (psize*T, n_out*T)
        else:
            w_feat = w_t[:fs_in]
            w_col = w_t[fs_in]

        a_full = jnp.kron(eye_t, w_feat)             # (fs_in*T, n_out*T)
        # Fold the roll produced by the (cyclically) previous layer into this
        # layer's weight as a static row permutation:
        #   even producer -> prev[j] = cat[(j+R) mod W]  => A_eff = roll(A, +R, 0)
        #   odd  producer -> prev[j] = cat[(j-R) mod W]  => A_eff = roll(A, -R, 0)
        prev_parity = ((l - 1) % L) % 2
        shift = R if prev_parity == 0 else -R
        a_eff = jnp.roll(a_full, shift, axis=0)

        # Per-column effective bias: bias + col * (weight of the constant "col"
        # input feature), tiled over the T capsule rows.  Shape (C, n_out*T).
        b_tile = jnp.tile(b, T)
        c_tile = jnp.tile(w_col, T)
        cols = jnp.arange(C, dtype=jnp.float32)[:, None]
        bias_all = b_tile[None, :] + cols * c_tile[None, :]
        layer_tensors.append((a_eff, bias_all))

    # Final roll (after the last layer of the last column) as a permutation
    # matrix applied in-kernel with one tiny matmul.
    w_last = feature_sizes[-1] * T
    last_parity = (L - 1) % 2
    shift_out = -R if last_parity == 0 else R
    p_final = jnp.roll(jnp.eye(w_last, dtype=jnp.float32), shift_out, axis=1)
    return prim_w, p_final, layer_tensors


# ---------------------------------------------------------------------------
# Fused Pallas kernel: whole capsule network forward in one launch
# ---------------------------------------------------------------------------
def _make_capsule_kernel(num_capsule_wide, num_layers, feature_sizes,
                         num_capsule_tall, block_batch):
    T = num_capsule_tall

    def kernel(primary_ref, prim_w_ref, p_final_ref, *rest):
        layer_refs = rest[:-1]
        out_ref = rest[-1]

        # Load every layer's weight / per-column bias into values ONCE; they are
        # reused across the fully unrolled (column, layer) loop below.
        a_mats = [layer_refs[2 * l][...] for l in range(num_layers)]
        biases = [layer_refs[2 * l + 1][...] for l in range(num_layers)]

        # Column-invariant layer-0 contribution of primary_input (computed once,
        # reused for every capsule column).
        prim_cat = jnp.dot(primary_ref[...], prim_w_ref[...],
                           preferred_element_type=jnp.float32)

        # Carried capsule state stays on-chip for the whole forward.
        prev = jnp.zeros((block_batch, feature_sizes[0] * T), jnp.float32)

        for col in range(num_capsule_wide):
            for l in range(num_layers):
                # One MXU matmul covers all T capsule rows of this layer
                # (block-diagonal weight, previous-layer roll already folded in).
                # TODO(synk): for large feature sizes, cast a_mats/prev to bf16
                # (keep f32 accumulation) to hit the bf16 MXU peak on v6e/v7x.
                z = jnp.dot(prev, a_mats[l], preferred_element_type=jnp.float32)
                z = z + biases[l][col:col + 1, :]    # bias + col feature (folded)
                if l == 0:
                    z = z + prim_cat                 # hoisted primary contribution
                prev = jnp.maximum(z, 0.0)           # ReLU

        # Apply the final roll as a permutation matmul and store once to HBM.
        out_ref[...] = jnp.dot(prev, p_final_ref[...],
                               preferred_element_type=jnp.float32
                               ).astype(out_ref.dtype)

    return kernel


def _pick_block_batch(batch):
    """Largest power-of-two block (<=512) that evenly divides the batch, so the
    'parallel' batch axis can be sharded across TensorCores; otherwise one block."""
    for cand in (512, 256, 128, 64, 32, 16, 8):
        if batch % cand == 0:
            return cand
    return batch


def capsule_forward(primary_input, params, *, num_capsule_wide, num_capsule_tall,
                    feature_sizes, input_data_size, roll_each_layer):
    assert feature_sizes[0] == feature_sizes[-1]
    assert input_data_size % num_capsule_tall == 0

    batch, data_size = primary_input.shape
    assert data_size == input_data_size
    T = num_capsule_tall
    L = len(feature_sizes) - 1
    out_width = feature_sizes[-1] * T

    prim_w, p_final, layer_tensors = _precompute_fused_params(
        params, num_capsule_wide=num_capsule_wide, num_capsule_tall=T,
        feature_sizes=feature_sizes, input_data_size=input_data_size,
        roll_each_layer=roll_each_layer)

    # Only the batch axis is tiled; weights are broadcast (same block every
    # grid step, so Pallas DMAs them once).  All resident data is tiny, so the
    # default scoped-VMEM limit is ample on every TPU generation.
    block_batch = _pick_block_batch(batch)

    flat_inputs = []
    layer_specs = []
    for a_eff, bias_all in layer_tensors:
        flat_inputs += [a_eff, bias_all]
        layer_specs += [
            pl.BlockSpec(a_eff.shape, lambda i: (0, 0)),
            pl.BlockSpec(bias_all.shape, lambda i: (0, 0)),
        ]

    kernel = _make_capsule_kernel(num_capsule_wide, L, feature_sizes, T,
                                  block_batch)

    return pl.pallas_call(
        kernel,
        out_shape=jax.ShapeDtypeStruct((batch, out_width), jnp.float32),
        grid=(pl.cdiv(batch, block_batch),),
        in_specs=[
            pl.BlockSpec((block_batch, input_data_size), lambda i: (i, 0)),
            pl.BlockSpec(prim_w.shape, lambda i: (0, 0)),
            pl.BlockSpec(p_final.shape, lambda i: (0, 0)),
        ] + layer_specs,
        out_specs=pl.BlockSpec((block_batch, out_width), lambda i: (i, 0)),
        compiler_params=pltpu.CompilerParams(
            dimension_semantics=("parallel",),
        ),
    )(primary_input, prim_w, p_final, *flat_inputs)


# ---------------------------------------------------------------------------
# Pure-JAX reference mirroring the PyTorch module (for a correctness check)
# ---------------------------------------------------------------------------
def _reference_forward(primary_input, params, **cfg):
    hi = jax.lax.Precision.HIGHEST

    def lin_relu(x, w_t, b):
        return jnp.maximum(jnp.dot(x, w_t, precision=hi) + b, 0.0)

    batch = primary_input.shape[0]
    fs = cfg["feature_sizes"]
    T = cfg["num_capsule_tall"]
    prev = jnp.zeros((batch, fs[0] * T), jnp.float32)
    psize = cfg["input_data_size"] // T
    roll = cfg["roll_each_layer"]
    for col in range(cfg["num_capsule_wide"]):
        for li, (w_t, b) in enumerate(params):
            isz = fs[li]
            outs = []
            for r in range(T):
                fv = prev[:, r * isz:(r + 1) * isz]
                xin = jnp.concatenate(
                    [fv, jnp.full((batch, 1), float(col), jnp.float32)], axis=1
                )
                if li == 0:
                    pv = primary_input[:, r * psize:(r + 1) * psize]
                    xin = jnp.concatenate([pv, xin], axis=1)
                outs.append(lin_relu(xin, w_t, b))
            if li % 2 == 0:
                outs.append(outs[0][:, :roll])
                prev = jnp.concatenate(outs, axis=1)[:, roll:]
            else:
                outs = [outs[-1][:, -roll:]] + outs
                prev = jnp.concatenate(outs, axis=1)[:, :-roll]
    return prev


if __name__ == "__main__":
    # Small configuration consistent with the module's constraints:
    #   feature_sizes[0] == feature_sizes[-1], input_data_size % num_capsule_tall == 0
    cfg = dict(
        num_capsule_wide=2,
        num_capsule_tall=2,
        feature_sizes=[8, 16, 8],
        input_data_size=16,
        roll_each_layer=2,
    )
    batch = 2

    key = jax.random.PRNGKey(0)
    key, kx = jax.random.split(key)
    primary_input = jax.random.normal(
        kx, (batch, cfg["input_data_size"]), dtype=jnp.float32
    )
    params = init_params(
        key,
        cfg["num_capsule_tall"],
        cfg["feature_sizes"],
        cfg["input_data_size"],
    )

    fwd = functools.partial(capsule_forward, **cfg)
    out = jax.jit(lambda x: fwd(x, params))(primary_input)
    out = jax.block_until_ready(out)

    ref = _reference_forward(primary_input, params, **cfg)
    assert out.shape == (batch, cfg["feature_sizes"][-1] * cfg["num_capsule_tall"])
    assert jnp.allclose(out, ref, atol=1e-4, rtol=1e-4), "mismatch vs JAX reference"

    print("KERNEL_OK")
</pallas_src>

<mosaic_0001>
module attributes {stable_mosaic.version = 11 : i64} {
  func.func @kernel(%arg0: i32, %arg1: memref<2x16xf32, #tpu.memory_space<vmem>>, %arg2: memref<16x32xf32, #tpu.memory_space<vmem>>, %arg3: memref<16x16xf32, #tpu.memory_space<vmem>>, %arg4: memref<16x32xf32, #tpu.memory_space<vmem>>, %arg5: memref<2x32xf32, #tpu.memory_space<vmem>>, %arg6: memref<32x16xf32, #tpu.memory_space<vmem>>, %arg7: memref<2x16xf32, #tpu.memory_space<vmem>>, %arg8: memref<2x16xf32, #tpu.memory_space<vmem>>) attributes {dimension_semantics = [#tpu.dimension_semantics<parallel>], iteration_bounds = array<i64: 1>, scalar_prefetch = 0 : i64, scratch_operands = 0 : i64, tpu.core_type = #tpu.core_type<tc>, window_params = [{transform_indices = @transform_0, window_bounds = array<i64: 2, 16>}, {pipeline_mode = #tpu.pipeline_mode<synchronous>, transform_indices = @transform_1, window_bounds = array<i64: 16, 32>}, {pipeline_mode = #tpu.pipeline_mode<synchronous>, transform_indices = @transform_2, window_bounds = array<i64: 16, 16>}, {pipeline_mode = #tpu.pipeline_mode<synchronous>, transform_indices = @transform_3, window_bounds = array<i64: 16, 32>}, {pipeline_mode = #tpu.pipeline_mode<synchronous>, transform_indices = @transform_4, window_bounds = array<i64: 2, 32>}, {pipeline_mode = #tpu.pipeline_mode<synchronous>, transform_indices = @transform_5, window_bounds = array<i64: 32, 16>}, {pipeline_mode = #tpu.pipeline_mode<synchronous>, transform_indices = @transform_6, window_bounds = array<i64: 2, 16>}, {transform_indices = @transform_7, window_bounds = array<i64: 2, 16>}]} {
    %c0 = arith.constant 0 : index
    %c0_0 = arith.constant 0 : index
    %0 = vector.load %arg4[%c0, %c0_0] : memref<16x32xf32, #tpu.memory_space<vmem>>, vector<16x32xf32>
    %c0_1 = arith.constant 0 : index
    %c0_2 = arith.constant 0 : index
    %1 = vector.load %arg6[%c0_1, %c0_2] : memref<32x16xf32, #tpu.memory_space<vmem>>, vector<32x16xf32>
    %c0_3 = arith.constant 0 : index
    %c0_4 = arith.constant 0 : index
    %2 = vector.load %arg5[%c0_3, %c0_4] : memref<2x32xf32, #tpu.memory_space<vmem>>, vector<2x32xf32>
    %c0_5 = arith.constant 0 : index
    %c0_6 = arith.constant 0 : index
    %3 = vector.load %arg7[%c0_5, %c0_6] : memref<2x16xf32, #tpu.memory_space<vmem>>, vector<2x16xf32>
    %c0_7 = arith.constant 0 : index
    %c0_8 = arith.constant 0 : index
    %4 = vector.load %arg1[%c0_7, %c0_8] : memref<2x16xf32, #tpu.memory_space<vmem>>, vector<2x16xf32>
    %c0_9 = arith.constant 0 : index
    %c0_10 = arith.constant 0 : index
    %5 = vector.load %arg2[%c0_9, %c0_10] : memref<16x32xf32, #tpu.memory_space<vmem>>, vector<16x32xf32>
    %cst = arith.constant dense<0.000000e+00> : vector<2x32xf32>
    %6 = tpu.matmul %4, %5, %cst {dimension_numbers = #tpu.dot_dimension_numbers<[1], [0], [0], [1], [0, 0, 1, 1], [], []>} : vector<2x16xf32>, vector<16x32xf32>, vector<2x32xf32> -> vector<2x32xf32>
    %cst_11 = arith.constant 0.000000e+00 : f32
    %7 = vector.broadcast %cst_11 : f32 to vector<2x16xf32>
    %cst_12 = arith.constant dense<0.000000e+00> : vector<2x32xf32>
    %8 = tpu.matmul %7, %0, %cst_12 {dimension_numbers = #tpu.dot_dimension_numbers<[1], [0], [0], [1], [0, 0, 1, 1], [], []>} : vector<2x16xf32>, vector<16x32xf32>, vector<2x32xf32> -> vector<2x32xf32>
    %9 = vector.extract_strided_slice %2 {offsets = [0, 0], sizes = [1, 32], strides = [1, 1]} : vector<2x32xf32> to vector<1x32xf32>
    %10 = vector.broadcast %9 : vector<1x32xf32> to vector<2x32xf32>
    %11 = arith.addf %8, %10 : vector<2x32xf32>
    %12 = arith.addf %11, %6 : vector<2x32xf32>
    %cst_13 = arith.constant 0.000000e+00 : f32
    %13 = vector.broadcast %cst_13 : f32 to vector<2x32xf32>
    %14 = arith.maximumf %12, %13 : vector<2x32xf32>
    %cst_14 = arith.constant dense<0.000000e+00> : vector<2x16xf32>
    %15 = tpu.matmul %14, %1, %cst_14 {dimension_numbers = #tpu.dot_dimension_numbers<[1], [0], [0], [1], [0, 0, 1, 1], [], []>} : vector<2x32xf32>, vector<32x16xf32>, vector<2x16xf32> -> vector<2x16xf32>
    %16 = vector.extract_strided_slice %3 {offsets = [0, 0], sizes = [1, 16], strides = [1, 1]} : vector<2x16xf32> to vector<1x16xf32>
    %17 = vector.broadcast %16 : vector<1x16xf32> to vector<2x16xf32>
    %18 = arith.addf %15, %17 : vector<2x16xf32>
    %cst_15 = arith.constant 0.000000e+00 : f32
    %19 = vector.broadcast %cst_15 : f32 to vector<2x16xf32>
    %20 = arith.maximumf %18, %19 : vector<2x16xf32>
    %cst_16 = arith.constant dense<0.000000e+00> : vector<2x32xf32>
    %21 = tpu.matmul %20, %0, %cst_16 {dimension_numbers = #tpu.dot_dimension_numbers<[1], [0], [0], [1], [0, 0, 1, 1], [], []>} : vector<2x16xf32>, vector<16x32xf32>, vector<2x32xf32> -> vector<2x32xf32>
    %22 = vector.extract_strided_slice %2 {offsets = [1, 0], sizes = [1, 32], strides = [1, 1]} : vector<2x32xf32> to vector<1x32xf32>
    %23 = vector.broadcast %22 : vector<1x32xf32> to vector<2x32xf32>
    %24 = arith.addf %21, %23 : vector<2x32xf32>
    %25 = arith.addf %24, %6 : vector<2x32xf32>
    %cst_17 = arith.constant 0.000000e+00 : f32
    %26 = vector.broadcast %cst_17 : f32 to vector<2x32xf32>
    %27 = arith.maximumf %25, %26 : vector<2x32xf32>
    %cst_18 = arith.constant dense<0.000000e+00> : vector<2x16xf32>
    %28 = tpu.matmul %27, %1, %cst_18 {dimension_numbers = #tpu.dot_dimension_numbers<[1], [0], [0], [1], [0, 0, 1, 1], [], []>} : vector<2x32xf32>, vector<32x16xf32>, vector<2x16xf32> -> vector<2x16xf32>
    %29 = vector.extract_strided_slice %3 {offsets = [1, 0], sizes = [1, 16], strides = [1, 1]} : vector<2x16xf32> to vector<1x16xf32>
    %30 = vector.broadcast %29 : vector<1x16xf32> to vector<2x16xf32>
    %31 = arith.addf %28, %30 : vector<2x16xf32>
    %cst_19 = arith.constant 0.000000e+00 : f32
    %32 = vector.broadcast %cst_19 : f32 to vector<2x16xf32>
    %33 = arith.maximumf %31, %32 : vector<2x16xf32>
    %c0_20 = arith.constant 0 : index
    %c0_21 = arith.constant 0 : index
    %34 = vector.load %arg3[%c0_20, %c0_21] : memref<16x16xf32, #tpu.memory_space<vmem>>, vector<16x16xf32>
    %cst_22 = arith.constant dense<0.000000e+00> : vector<2x16xf32>
    %35 = tpu.matmul %33, %34, %cst_22 {dimension_numbers = #tpu.dot_dimension_numbers<[1], [0], [0], [1], [0, 0, 1, 1], [], []>} : vector<2x16xf32>, vector<16x16xf32>, vector<2x16xf32> -> vector<2x16xf32>
    %c0_23 = arith.constant 0 : index
    %c0_24 = arith.constant 0 : index
    %36 = vector.load %arg8[%c0_23, %c0_24] : memref<2x16xf32, #tpu.memory_space<vmem>>, vector<2x16xf32>
    tpu.vector_store %arg8[%c0_23, %c0_24], %35 {strides = array<i32>} : memref<2x16xf32, #tpu.memory_space<vmem>>, vector<2x16xf32>,
    return
  }
  func.func @transform_0(%arg0: i32) -> (i32, i32) {
    %c0_i32 = arith.constant 0 : i32
    %c0_i32_0 = arith.constant 0 : i32
    return %arg0, %c0_i32 : i32, i32
  }
  func.func @transform_1(%arg0: i32) -> (i32, i32) {
    %c0_i32 = arith.constant 0 : i32
    %c0_i32_0 = arith.constant 0 : i32
    %c0_i32_1 = arith.constant 0 : i32
    return %c0_i32, %c0_i32_0 : i32, i32
  }
  func.func @transform_2(%arg0: i32) -> (i32, i32) {
    %c0_i32 = arith.constant 0 : i32
    %c0_i32_0 = arith.constant 0 : i32
    %c0_i32_1 = arith.constant 0 : i32
    return %c0_i32, %c0_i32_0 : i32, i32
  }
  func.func @transform_3(%arg0: i32) -> (i32, i32) {
    %c0_i32 = arith.constant 0 : i32
    %c0_i32_0 = arith.constant 0 : i32
    %c0_i32_1 = arith.constant 0 : i32
    return %c0_i32, %c0_i32_0 : i32, i32
  }
  func.func @transform_4(%arg0: i32) -> (i32, i32) {
    %c0_i32 = arith.constant 0 : i32
    %c0_i32_0 = arith.constant 0 : i32
    %c0_i32_1 = arith.constant 0 : i32
    return %c0_i32, %c0_i32_0 : i32, i32
  }
  func.func @transform_5(%arg0: i32) -> (i32, i32) {
    %c0_i32 = arith.constant 0 : i32
    %c0_i32_0 = arith.constant 0 : i32
    %c0_i32_1 = arith.constant 0 : i32
    return %c0_i32, %c0_i32_0 : i32, i32
  }
  func.func @transform_6(%arg0: i32) -> (i32, i32) {
    %c0_i32 = arith.constant 0 : i32
    %c0_i32_0 = arith.constant 0 : i32
    %c0_i32_1 = arith.constant 0 : i32
    return %c0_i32, %c0_i32_0 : i32, i32
  }
  func.func @transform_7(%arg0: i32) -> (i32, i32) {
    %c0_i32 = arith.constant 0 : i32
    %c0_i32_0 = arith.constant 0 : i32
    return %arg0, %c0_i32 : i32, i32
  }
}

</mosaic_0001>

<bundles_post_ra>
// kernel: tile.26
= control target key start
LH: loop header
LB: loop body
LE: loop exit
PB: predicated region body
PF: predicated region fallthrough
CT: control target
= control target key end

     0   :  { %s22_s0 = inlined_call_operand.vmem [shape: f32[8], index: 0, kind: input, shape index: {}]   ;;  %s23_s1 = inlined_call_operand.vmem [shape: f32[2,8], index: 1, kind: output, shape index: {}]  }
   0x1   :  { %v4_v0 = vld [vmem:[%s22_s0] ss:$0 sm:$0xff] }
   0x2   :  { %5 = vst [vmem:[%s23_s1] sm:$0x3] %v4_v0 }

// kernel: tile.18
= control target key start
LH: loop header
LB: loop body
LE: loop exit
PB: predicated region body
PF: predicated region fallthrough
CT: control target
= control target key end

     0   :  { %s22_s0 = inlined_call_operand.vmem [shape: f32[16], index: 0, kind: input, shape index: {}]   ;;  %s23_s1 = inlined_call_operand.vmem [shape: f32[2,16], index: 1, kind: output, shape index: {}]  }
   0x1   :  { %v4_v0 = vld [vmem:[%s22_s0] ss:$0 sm:$0xff] }
   0x2   :  { %5 = vst [vmem:[%s23_s1] sm:$0x3] %v4_v0 }

// kernel: _lambda_.1
= control target key start
LH: loop header
LB: loop body
LE: loop exit
PB: predicated region body
PF: predicated region fallthrough
CT: control target
= control target key end

     0   :  { %vm38_vm0 = vcmask 130048   ;;  %s330_s0 = inlined_call_operand.vmem [shape: f32[2,16], index: 0, kind: input, shape index: {}]   ;;  %s331_s1 = inlined_call_operand.vmem [shape: f32[16,32], index: 1, kind: input, shape index: {}]   ;;  %s332_s2 = inlined_call_operand.vmem [shape: f32[16,16], index: 2, kind: input, shape index: {}]   ;;  %s333_s3 = inlined_call_operand.vmem [shape: f32[16,32], index: 3, kind: input, shape index: {}]   ;;  %s334_s4 = inlined_call_operand.vmem [shape: f32[2,32], index: 4, kind: input, shape index: {}]   ;;  %s335_s5 = inlined_call_operand.vmem [shape: f32[32,16], index: 5, kind: input, shape index: {}]   ;;  %s336_s6 = inlined_call_operand.vmem [shape: f32[2,16], index: 6, kind: input, shape index: {}]   ;;  %s337_s7 = inlined_call_operand.hbm [shape: f32[2,16], index: 7, kind: output, shape index: {}]  }
   0x1   :  { %v28_v0 = vld [vmem:[%s333_s3 + $0x8] sm:$0xff]  ;;  %v27_v2 = vld [vmem:[%s333_s3] sm:$0xff] }
   0x2   :  { %v37_v1 = vld [vmem:[%s331_s1 + $0x8] sm:$0xff]  ;;  %80 = vmatpush.msra.mxu1 %v28_v0  ;;  %v36_v3 = vld [vmem:[%s331_s1] sm:$0xff]  ;;  %132 = vmatpush.msra.mxu3 %v28_v0 }
   0x3   :  { %56 = vmatpush.msra.mxu0 %v37_v1  ;;  %v35_v4 = vld [vmem:[%s330_s0] sm:$0x3] }
   0x4   :  { %12 = vsyncpa [#allocation3], 0  ;;  %81 = vmatpush.msra.mxu1 %v27_v2  ;;  %v241_v5 = vmov 0.0   ;;  %133 = vmatpush.msra.mxu3 %v27_v2  ;;  %v32_v6 = vld [vmem:[%s335_s5 + $0x18] sm:$0xff]  ;;  %v31_v7 = vld [vmem:[%s335_s5 + $0x10] sm:$0xff]  ;;  %vm89_vm1 = vcmask 261120  }
   0x5   :  { %57 = vmatpush.msra.mxu0 %v36_v3  ;;  %82 = vmatmul.f32.vlgmr.msra.gmra.mxu1 %v241_v5  ;;  %v30_v8 = vld [vmem:[%s335_s5 + $0x8] sm:$0xff]  ;;  %v29_v9 = vld [vmem:[%s335_s5] sm:$0xff]  ;;  %s242_s21 = smov [#allocation2]   ;;  %s199_s25 = sshll.u32 %s337_s7, 4  ;;  %vm190_vm2 = vcmask 123904   ;;  %s200_s25 = int_to_ptr.hbm [resolvable:$true] %s199_s25 }
   0x6   :  { %208 = vmatmul.msk.f32.vlgmr.msra.gmra.mxu0 %vm38_vm0, %v35_v4  ;;  %105 = vmatpush.msra.mxu2 %v32_v6  ;;  %v33_v10 = vld [vmem:[%s334_s4] sm:$0x3]  ;;  %v166_v22 = vld [vmem:[%s332_s2 + $0x8] sm:$0xff]  ;;  %s197_s22 = sshll.u32 %s242_s21, 4  ;;  %s198_s22 = int_to_ptr.vmem [resolvable:$true] %s197_s22 }
   0x7   :  { %156 = vmatpush.msrb.mxu0 %v32_v6  ;;  %v62_v11 = vperm.slane %v33_v10, 0  ;;  %v34_v17 = vld [vmem:[%s336_s6] sm:$0x3]  ;;  %184 = vmatpush.msrb.mxu1 %v166_v22  ;;  %v114_v23 = vperm.slane %v33_v10, 1 }
   0x8   :  { %106 = vmatpush.msra.mxu2 %v31_v7  ;;  %v88_v18 = vperm.slane %v34_v17, 0  ;;  %v165_v28 = vld [vmem:[%s332_s2] sm:$0xff]  ;;  %v140_v29 = vperm.slane %v34_v17, 1 }
   0x9   :  { %157 = vmatpush.msrb.mxu0 %v31_v7  ;;  %185 = vmatpush.msrb.mxu1 %v165_v28 }
   0xa   :  { %107 = vmatpush.msra.mxu2 %v30_v8 }
   0xb   :  { %158 = vmatpush.msrb.mxu0 %v30_v8 }
   0xc   :  { %108 = vmatpush.msra.mxu2 %v29_v9 }
   0xd   :  { %159 = vmatpush.msrb.mxu0 %v29_v9 }
  0x82   :  { %v83_v12 = vpop.f32.mrf.mxu1 }
  0x83   :  { %v59_v13 = vpop.f32.mrf.mxu0  ;;  %v84_v14 = vadd.f32 %v83_v12, %v62_v11 }
  0x85   :  { %v86_v15 = vadd.f32 %v84_v14, %v59_v13 }
  0x87   :  { %v87_v16 = vmax.f32 %v86_v15, 0.0 }
  0x89   :  { %209 = vmatmul.msk.f32.vlgmr.msra.gmra.mxu2 %vm89_vm1, %v87_v16 }
 0x10c   :  { %v110_v19 = vpop.f32.mrf.mxu2 }
 0x10d   :  { %v111_v20 = vadd.f32 %v110_v19, %v88_v18 }
 0x10f   :  { %v113_v21 = vmax.f32 %v111_v20, 0.0 }
 0x111   :  { %210 = vmatmul.msk.f32.vlgmr.msra.gmra.mxu3 %vm38_vm0, %v113_v21 }
 0x194   :  { %v135_v24 = vpop.f32.mrf.mxu3 }
 0x195   :  { %v136_v25 = vadd.f32 %v135_v24, %v114_v23 }
 0x197   :  { %v138_v26 = vadd.f32 %v136_v25, %v59_v13 }
 0x199   :  { %v139_v27 = vmax.f32 %v138_v26, 0.0 }
 0x19b   :  { %211 = vmatmul.msk.f32.vlgmr.msrb.gmra.mxu0 %vm89_vm1, %v139_v27 }
 0x218   :  { %v161_v30 = vpop.f32.mrf.mxu0 }
 0x219   :  { %v162_v31 = vadd.f32 %v161_v30, %v140_v29 }
 0x21b   :  { %v164_v32 = vmax.f32 %v162_v31, 0.0 }
 0x21d   :  { %212 = vmatmul.msk.f32.vlgmr.msrb.gmra.mxu1 %vm38_vm0, %v164_v32 }
 0x29a   :  { %v187_v33 = vpop.f32.mrf.mxu1 }
 0x29b   :  { %191 = vst.msk [vmem:[#allocation2] sm:$0x3] %vm190_vm2, %v187_v33 }
 0x29c   :  { %202 = dma.vmem_to_hbm [thread:$0]  %s198_s22, 32, %s200_s25, [#allocation3]  }
 0x29d   :  { %239 = dma.done.wait [#allocation3], 32  }
 0x29e   :  { %240 = vsyncadd [#allocation3], 4294967264 }
 0x29f   :  { %207 = vsyncpa [#allocation3], 1 }

</bundles_post_ra>
